<compile_context>
chip_gen: v7x
topology: tpu7x:2x2x1
jax: 0.10.0
libtpu: 0.0.40
codegen_flags: <defaults>
</compile_context>

<pallas_src>
import jax
import jax.numpy as jnp
from jax.experimental import pallas as pl
from jax.experimental.pallas import tpu as pltpu


def _round_up(x, m):
    return (x + m - 1) // m * m


def _largest_divisor_tile(total, step, cap):
    """Largest multiple of `step` that divides `total` and is <= cap (floor: step)."""
    best = step
    t = step
    top = min(cap, total)
    while t <= top:
        if total % t == 0:
            best = t
        t += step
    return best


def _pick_batch_tile(N):
    """Pick (TN, N_pad): prefer zero padding waste; fall back to a 128-row tile."""
    n8 = _round_up(N, 8)
    best = _largest_divisor_tile(n8, 8, 256)
    if best >= 64 or n8 <= 256:
        return best, n8
    # No reasonable divisor: accept bounded padding with an MXU-friendly tile.
    return 128, _round_up(N, 128)


def _vmem_capacity_bytes():
    try:
        return int(pltpu.get_tpu_info().vmem_capacity_bytes)
    except Exception:
        return 64 << 20  # conservative fallback (v7x per-TensorCore)


# ----------------------------------------------------------------------------
# Pre-kernel: WeightNorm(dim=0) -> w = g * v / ||v||, written TRANSPOSED [D, TC]
# so the hot kernel consumes a [D, C] RHS directly (no separate XLA transpose).
# ----------------------------------------------------------------------------
def _weightnorm_t_kernel(v_ref, g_ref, wt_ref):
    v = v_ref[...]                                             # [TCw, D] f32
    norm = jnp.sqrt(jnp.sum(v * v, axis=1, keepdims=True))     # [TCw, 1]
    w = v * (g_ref[...] / norm)                                # [TCw, D]
    wt_ref[...] = w.T                                          # [D, TCw] (cheap XLU transpose)


# ----------------------------------------------------------------------------
# Hot kernel, resident-weight path: whole [D, C_pad] weight lives in VMEM.
# x is normalized exactly once per batch tile; scale_factor folded into inv.
# ----------------------------------------------------------------------------
def _dist_linear_resident_kernel(x_ref, wt_ref, o_ref):
    x = x_ref[...]                                             # [TN, D] f32
    norm = jnp.sqrt(jnp.sum(x * x, axis=1, keepdims=True))     # [TN, 1]
    inv = 2.0 * pl.reciprocal(norm + 1e-5, approx=False)       # (approx=True OK if tol relaxed)
    o_ref[...] = jnp.dot(
        x * inv, wt_ref[...], preferred_element_type=jnp.float32
    ).astype(o_ref.dtype)                                      # [TN, C_pad]


# ----------------------------------------------------------------------------
# Hot kernel, tiled path: class dim tiled; normalized x cached in VMEM scratch
# under pl.when(j == 0) so the normalization is NOT redone per class tile.
# ----------------------------------------------------------------------------
def _dist_linear_tiled_kernel(x_ref, wt_ref, o_ref, xs_ref):
    @pl.when(pl.program_id(1) == 0)
    def _():
        x = x_ref[...]                                         # [TN, D]
        norm = jnp.sqrt(jnp.sum(x * x, axis=1, keepdims=True))
        xs_ref[...] = x * (2.0 * pl.reciprocal(norm + 1e-5, approx=False))

    o_ref[...] = jnp.dot(
        xs_ref[...], wt_ref[...], preferred_element_type=jnp.float32
    ).astype(o_ref.dtype)                                      # [TN, TC]


def dist_linear(x, weight_v, weight_g):
    """scores = 2 * (x / (||x||+1e-5)) @ (g * v / ||v||).T   (distLinear forward)."""
    N, D = x.shape
    C, D2 = weight_v.shape
    assert D == D2 and weight_g.shape == (C, 1)

    x = x.astype(jnp.float32)
    weight_v = weight_v.astype(jnp.float32)
    weight_g = weight_g.astype(jnp.float32)

    # --- chip-gated VMEM budget (v7x: 64 MiB/TC, v5e/v6e: 128 MiB) ---
    vmem_cap = _vmem_capacity_bytes()
    small_vmem = vmem_cap <= (64 << 20)
    budget = max(min(int(0.6 * vmem_cap), 96 << 20), 16 << 20)
    hard_cap = int(0.9 * vmem_cap)

    # --- padding / tile selection (minimize waste, keep (8,128) alignment) ---
    C_pad = _round_up(C, 128)
    TN, N_pad = _pick_batch_tile(N)

    # Pad class dim only if needed: padded rows get v=1, g=0 -> normalized row is
    # exactly 0 (no 0/0), so padded output columns are 0 and are sliced away.
    if C_pad != C:
        v_p = jnp.pad(weight_v, ((0, C_pad - C), (0, 0)), constant_values=1.0)
        g_p = jnp.pad(weight_g, ((0, C_pad - C), (0, 0)), constant_values=0.0)
    else:
        v_p, g_p = weight_v, weight_g
    # Pad batch only if needed (padded rows are zeros -> zero output rows).
    x_p = x if N_pad == N else jnp.pad(x, ((0, N_pad - N), (0, 0)))

    # --- weight-norm pre-kernel (mem-bound; small class tile, explicit vmem limit) ---
    TCw = 256 if (C_pad % 256 == 0 and 16 * 256 * D <= (24 << 20)) else 128
    wn_footprint = 16 * TCw * D + (1 << 20)
    wt = pl.pallas_call(
        _weightnorm_t_kernel,
        out_shape=jax.ShapeDtypeStruct((D, C_pad), jnp.float32),
        grid=(C_pad // TCw,),
        in_specs=[
            pl.BlockSpec((TCw, D), lambda j: (j, 0)),
            pl.BlockSpec((TCw, 1), lambda j: (j, 0)),
        ],
        out_specs=pl.BlockSpec((D, TCw), lambda j: (0, j)),
        compiler_params=pltpu.CompilerParams(
            dimension_semantics=("parallel",),
            vmem_limit_bytes=int(min(max(wn_footprint, 16 << 20), hard_cap)),
        ),
    )(v_p, g_p)

    # --- hot kernel: pick resident-weight path whenever the full weight fits VMEM ---
    resident_bytes = 4 * (2 * TN * D + 2 * D * C_pad + 2 * TN * C_pad) + (2 << 20)

    if resident_bytes <= budget:
        out = pl.pallas_call(
            _dist_linear_resident_kernel,
            out_shape=jax.ShapeDtypeStruct((N_pad, C_pad), jnp.float32),
            grid=(N_pad // TN,),
            in_specs=[
                pl.BlockSpec((TN, D), lambda i: (i, 0)),
                pl.BlockSpec((D, C_pad), lambda i: (0, 0)),   # constant index -> DMA'd once
            ],
            out_specs=pl.BlockSpec((TN, C_pad), lambda i: (i, 0)),
            compiler_params=pltpu.CompilerParams(
                dimension_semantics=("parallel",),
                vmem_limit_bytes=int(min(max(resident_bytes + (4 << 20), 16 << 20), hard_cap)),
            ),
        )(x_p, wt)
    else:
        tc_cap = 256 if small_vmem else 512
        TC = _largest_divisor_tile(C_pad, 128, tc_cap)
        tile_bytes = 4 * (2 * TN * D + 2 * D * TC + 2 * TN * TC + TN * D) + (2 << 20)
        # TODO(synk): for very large D (f32 D*TC block alone near the budget) also tile the
        # contraction dim (trailing "arbitrary" K axis + f32 scratch accumulator).
        out = pl.pallas_call(
            _dist_linear_tiled_kernel,
            out_shape=jax.ShapeDtypeStruct((N_pad, C_pad), jnp.float32),
            grid=(N_pad // TN, C_pad // TC),
            in_specs=[
                pl.BlockSpec((TN, D), lambda i, j: (i, 0)),
                pl.BlockSpec((D, TC), lambda i, j: (0, j)),
            ],
            out_specs=pl.BlockSpec((TN, TC), lambda i, j: (i, j)),
            scratch_shapes=[pltpu.VMEM((TN, D), jnp.float32)],
            compiler_params=pltpu.CompilerParams(
                dimension_semantics=("parallel", "arbitrary"),
                vmem_limit_bytes=int(min(max(tile_bytes, 16 << 20), hard_cap)),
            ),
        )(x_p, wt)

    return out[:N, :C]


def init_params(key, indim, outdim):
    # nn.Linear default init: U(-1/sqrt(indim), 1/sqrt(indim)).
    bound = 1.0 / (indim ** 0.5)
    v = jax.random.uniform(key, (outdim, indim), jnp.float32, -bound, bound)
    # WeightNorm initializes g = ||v|| per output row (dim=0).
    g = jnp.sqrt(jnp.sum(v * v, axis=1, keepdims=True))
    return v, g


if __name__ == "__main__":
    indim, outdim, batch = 32, 16, 8
    key = jax.random.PRNGKey(0)
    kx, kw = jax.random.split(key)

    x = jax.random.normal(kx, (batch, indim), jnp.float32)
    weight_v, weight_g = init_params(kw, indim, outdim)

    scores = dist_linear(x, weight_v, weight_g)
    jax.block_until_ready(scores)

    # Pure-JAX reference (same math, no Pallas).
    x_n = x / (jnp.linalg.norm(x, axis=1, keepdims=True) + 1e-5)
    w = weight_g * weight_v / jnp.linalg.norm(weight_v, axis=1, keepdims=True)
    ref = 2.0 * x_n @ w.T
    assert scores.shape == ref.shape
    assert jnp.allclose(scores, ref, atol=1e-4, rtol=1e-4), float(
        jnp.max(jnp.abs(scores - ref))
    )

    print("KERNEL_OK")
</pallas_src>

<mosaic_0001>
module attributes {stable_mosaic.version = 11 : i64} {
  func.func @_weightnorm_t_kernel(%arg0: i32, %arg1: memref<128x32xf32, #tpu.memory_space<vmem>>, %arg2: memref<128x1xf32, #tpu.memory_space<vmem>>, %arg3: memref<32x128xf32, #tpu.memory_space<vmem>>) attributes {dimension_semantics = [#tpu.dimension_semantics<parallel>], iteration_bounds = array<i64: 1>, scalar_prefetch = 0 : i64, scratch_operands = 0 : i64, tpu.core_type = #tpu.core_type<tc>, window_params = [{transform_indices = @transform_0, window_bounds = array<i64: 128, 32>}, {transform_indices = @transform_1, window_bounds = array<i64: 128, 1>}, {transform_indices = @transform_2, window_bounds = array<i64: 32, 128>}]} {
    %c0 = arith.constant 0 : index
    %c0_0 = arith.constant 0 : index
    %0 = vector.load %arg1[%c0, %c0_0] : memref<128x32xf32, #tpu.memory_space<vmem>>, vector<128x32xf32>
    %1 = arith.mulf %0, %0 : vector<128x32xf32>
    %cst = arith.constant dense<0.000000e+00> : vector<128xf32>
    %2 = vector.multi_reduction <add>, %1, %cst [1] : vector<128x32xf32> to vector<128xf32>
    %3 = vector.shape_cast %2 : vector<128xf32> to vector<128x1xf32>
    %4 = math.sqrt %3 : vector<128x1xf32>
    %c0_1 = arith.constant 0 : index
    %c0_2 = arith.constant 0 : index
    %5 = vector.load %arg2[%c0_1, %c0_2] : memref<128x1xf32, #tpu.memory_space<vmem>>, vector<128x1xf32>
    %6 = arith.divf %5, %4 : vector<128x1xf32>
    %7 = vector.broadcast %6 : vector<128x1xf32> to vector<128x32xf32>
    %8 = arith.mulf %0, %7 : vector<128x32xf32>
    %9 = tpu.transpose %8, [1, 0] : vector<128x32xf32> -> vector<32x128xf32>
    %c0_3 = arith.constant 0 : index
    %c0_4 = arith.constant 0 : index
    %10 = vector.load %arg3[%c0_3, %c0_4] : memref<32x128xf32, #tpu.memory_space<vmem>>, vector<32x128xf32>
    tpu.vector_store %arg3[%c0_3, %c0_4], %9 {strides = array<i32>} : memref<32x128xf32, #tpu.memory_space<vmem>>, vector<32x128xf32>,
    return
  }
  func.func @transform_0(%arg0: i32) -> (i32, i32) {
    %c0_i32 = arith.constant 0 : i32
    %c0_i32_0 = arith.constant 0 : i32
    return %arg0, %c0_i32 : i32, i32
  }
  func.func @transform_1(%arg0: i32) -> (i32, i32) {
    %c0_i32 = arith.constant 0 : i32
    %c0_i32_0 = arith.constant 0 : i32
    return %arg0, %c0_i32 : i32, i32
  }
  func.func @transform_2(%arg0: i32) -> (i32, i32) {
    %c0_i32 = arith.constant 0 : i32
    %c0_i32_0 = arith.constant 0 : i32
    return %c0_i32, %arg0 : i32, i32
  }
}

</mosaic_0001>

<bundles_post_ra>
// kernel: tpu_custom_call.1
= control target key start
LH: loop header
LB: loop body
LE: loop exit
PB: predicated region body
PF: predicated region fallthrough
CT: control target
= control target key end

     0   :  { %vm44_vm0 = vcmask 261120   ;;  %s838_s0 = inlined_call_operand.vmem [shape: f32[128,32], index: 0, kind: input, shape index: {}]   ;;  %s839_s1 = inlined_call_operand.vmem [shape: f32[128,1], index: 1, kind: input, shape index: {}]   ;;  %s840_s2 = inlined_call_operand.hbm [shape: f32[32,128], index: 2, kind: output, shape index: {}]  }
   0x1   :  { %v517_v0 = vld [vmem:[%s838_s0 + $0x10] sm:$0xff]  ;;  %v522_v1 = vld [vmem:[%s838_s0] sm:$0xff]  ;;  %v527_v2 = vld [vmem:[%s838_s0 + $0x18] sm:$0xff] }
   0x2   :  { %v30_v3 = vmul.f32 %v517_v0, %v517_v0  ;;  %v28_v4 = vmul.f32 %v522_v1, %v522_v1  ;;  %v31_v5 = vmul.f32 %v527_v2, %v527_v2  ;;  %v538_v6 = vld [vmem:[%s838_s0 + $0x8] sm:$0xff]  ;;  %v550_v9 = vld [vmem:[%s838_s0 + $0x20] sm:$0xff] }
   0x3   :  { %v29_v7 = vmul.f32 %v538_v6, %v538_v6  ;;  %v545_v8 = vld [vmem:[%s838_s0 + $0x28] sm:$0xff]  ;;  %v32_v15 = vmul.f32 %v550_v9, %v550_v9 }
   0x4   :  { %v51_v10 = vsel %vm44_vm0, %v30_v3, 0.0  ;;  %v45_v11 = vsel %vm44_vm0, %v28_v4, 0.0  ;;  %v54_v12 = vsel %vm44_vm0, %v31_v5, 0.0  ;;  %v33_v14 = vmul.f32 %v545_v8, %v545_v8 }
   0x5   :  { %52 = vadd.xlane.f32.xlu1 %v51_v10  ;;  %46 = vadd.xlane.f32.xlu0 %v45_v11  ;;  %v48_v13 = vsel %vm44_vm0, %v29_v7, 0.0 }
   0x6   :  { %7 = vsyncpa [#allocation3], 0  ;;  %v563_v16 = vld [vmem:[%s838_s0 + $0x38] sm:$0xff]  ;;  %v568_v17 = vld [vmem:[%s838_s0 + $0x30] sm:$0xff]  ;;  %v60_v18 = vsel %vm44_vm0, %v33_v14, 0.0  ;;  %v57_v19 = vsel %vm44_vm0, %v32_v15, 0.0 }
   0x7   :  { %v35_v20 = vmul.f32 %v563_v16, %v563_v16  ;;  %v34_v21 = vmul.f32 %v568_v17, %v568_v17  ;;  %v579_v22 = vld [vmem:[%s838_s0 + $0x48] sm:$0xff]  ;;  %v584_v23 = vld [vmem:[%s838_s0 + $0x40] sm:$0xff]  ;;  %v595_v28 = vld [vmem:[%s838_s0 + $0x58] sm:$0xff]  ;;  %v495_v48 = vmov 0  }
   0x8   :  { %v37_v26 = vmul.f32 %v579_v22, %v579_v22  ;;  %v36_v27 = vmul.f32 %v584_v23, %v584_v23  ;;  %v600_v29 = vld [vmem:[%s838_s0 + $0x50] sm:$0xff]  ;;  %v39_v32 = vmul.f32 %v595_v28, %v595_v28  ;;  %v611_v34 = vld [vmem:[%s838_s0 + $0x68] sm:$0xff]  ;;  %v616_v35 = vld [vmem:[%s838_s0 + $0x60] sm:$0xff]  ;;  %405 = vset.pattern.permute.xlu0 %v495_v48  ;;  %406 = vset.pattern.permute.xlu1 %v495_v48 }
   0x9   :  { %55 = vadd.xlane.f32.xlu1 %v54_v12  ;;  %49 = vadd.xlane.f32.xlu0 %v48_v13  ;;  %v66_v24 = vsel %vm44_vm0, %v35_v20, 0.0  ;;  %v63_v25 = vsel %vm44_vm0, %v34_v21, 0.0  ;;  %v38_v33 = vmul.f32 %v600_v29, %v600_v29  ;;  %v41_v37 = vmul.f32 %v611_v34, %v611_v34  ;;  %v627_v40 = vld [vmem:[%s838_s0 + $0x78] sm:$0xff]  ;;  %v632_v41 = vld [vmem:[%s838_s0 + $0x70] sm:$0xff] }
   0xa   :  { %v72_v30 = vsel %vm44_vm0, %v37_v26, 0.0  ;;  %v69_v31 = vsel %vm44_vm0, %v36_v27, 0.0  ;;  %v78_v36 = vsel %vm44_vm0, %v39_v32, 0.0  ;;  %v40_v39 = vmul.f32 %v616_v35, %v616_v35 }
   0xb   :  { %v75_v38 = vsel %vm44_vm0, %v38_v33, 0.0  ;;  %v84_v42 = vsel %vm44_vm0, %v41_v37, 0.0  ;;  %v43_v43 = vmul.f32 %v627_v40, %v627_v40  ;;  %v42_v45 = vmul.f32 %v632_v41, %v632_v41 }
   0xc   :  { %v81_v44 = vsel %vm44_vm0, %v40_v39, 0.0 }
   0xd   :  { %61 = vadd.xlane.f32.xlu1 %v60_v18  ;;  %58 = vadd.xlane.f32.xlu0 %v57_v19  ;;  %v90_v46 = vsel %vm44_vm0, %v43_v43, 0.0  ;;  %v87_v47 = vsel %vm44_vm0, %v42_v45, 0.0 }
  0x11   :  { %67 = vadd.xlane.f32.xlu1 %v66_v24  ;;  %64 = vadd.xlane.f32.xlu0 %v63_v25 }
  0x15   :  { %73 = vadd.xlane.f32.xlu1 %v72_v30  ;;  %70 = vadd.xlane.f32.xlu0 %v69_v31 }
  0x19   :  { %79 = vadd.xlane.f32.xlu1 %v78_v36  ;;  %76 = vadd.xlane.f32.xlu0 %v75_v38  ;;  %v205_v38 = vld [vmem:[%s839_s1] sm:$0xff] }
  0x1d   :  { %85 = vadd.xlane.f32.xlu1 %v84_v42  ;;  %82 = vadd.xlane.f32.xlu0 %v81_v44 }
  0x21   :  { %91 = vadd.xlane.f32.xlu1 %v90_v46  ;;  %88 = vadd.xlane.f32.xlu0 %v87_v47 }
  0x92   :  { %v53_v49 = vpop.xlane.xlu1 %52  ;;  %v47_v50 = vpop.xlane.xlu0 %46 }
  0x93   :  { %407 = vrsqrt.f32 %v53_v49  ;;  %vm95_vm1 = vcmp.eq.f32.partialorder %v47_v50, inf  ;;  %v98_v61 = vand.u32 2147483648, %v47_v50  ;;  %vm97_vm2 = vcmp.eq.f32.partialorder %v47_v50, 0.0 }
  0x94   :  { %409 = vrsqrt.f32 %v47_v50  ;;  %vm109_vm3 = vcmp.eq.f32.partialorder %v53_v49, inf  ;;  %v112_v12 = vand.u32 2147483648, %v53_v49  ;;  %vm111_vm5 = vcmp.eq.f32.partialorder %v53_v49, 0.0 }
  0x96   :  { %v56_v51 = vpop.xlane.xlu1 %55  ;;  %v50_v52 = vpop.xlane.xlu0 %49 }
  0x97   :  { %411 = vrsqrt.f32 %v56_v51  ;;  %vm102_vm4 = vcmp.eq.f32.partialorder %v50_v52, inf  ;;  %v105_v13 = vand.u32 2147483648, %v50_v52  ;;  %vm104_vm6 = vcmp.eq.f32.partialorder %v50_v52, 0.0 }
  0x98   :  { %413 = vrsqrt.f32 %v50_v52  ;;  %vm116_vm7 = vcmp.eq.f32.partialorder %v56_v51, inf  ;;  %v119_v27 = vand.u32 2147483648, %v56_v51  ;;  %vm118_vm8 = vcmp.eq.f32.partialorder %v56_v51, 0.0 }
  0x9a   :  { %v642_v53 = vpop.xlane.xlu1 %61  ;;  %v644_v54 = vpop.xlane.xlu0 %58 }
  0x9b   :  { %415 = vrsqrt.f32 %v644_v54  ;;  %vm123_vm9 = vcmp.eq.f32.partialorder %v644_v54, inf  ;;  %vm130_vm10 = vcmp.eq.f32.partialorder %v642_v53, inf  ;;  %vm132_vm11 = vcmp.eq.f32.partialorder %v642_v53, 0.0 }
  0x9c   :  { %417 = vrsqrt.f32 %v642_v53  ;;  %v133_v42 = vand.u32 2147483648, %v642_v53  ;;  %vm125_vm12 = vcmp.eq.f32.partialorder %v644_v54, 0.0  ;;  %v126_v43 = vand.u32 2147483648, %v644_v54 }
  0x9d   :  { %v408_v55 = vpop.eup %407 }
  0x9e   :  { %v410_v56 = vpop.eup %409  ;;  %v648_v57 = vpop.xlane.xlu1 %67  ;;  %v108_v58 = vmul.f32 %v408_v55, %v53_v49  ;;  %v206_v55 = vld [vmem:[%s839_s1 + $0x8] sm:$0xff] }
  0x9f   :  { %v94_v59 = vmul.f32 %v410_v56, %v47_v50  ;;  %v650_v60 = vpop.xlane.xlu0 %64  ;;  %419 = vrsqrt.f32 %v648_v57  ;;  %vm144_vm13 = vcmp.eq.f32.partialorder %v648_v57, inf }
  0xa0   :  { %421 = vrsqrt.f32 %v650_v60  ;;  %v110_v7 = vsel %vm109_vm3, %v53_v49, %v108_v58  ;;  %vm137_vm14 = vcmp.eq.f32.partialorder %v650_v60, inf  ;;  %v140_v56 = vand.u32 2147483648, %v650_v60 }
  0xa1   :  { %v412_v62 = vpop.eup %411  ;;  %v96_v63 = vsel %vm95_vm1, %v47_v50, %v94_v59  ;;  %v113_v19 = vsel %vm111_vm5, %v112_v12, %v110_v7  ;;  %vm139_vm1 = vcmp.eq.f32.partialorder %v650_v60, 0.0 }
  0xa2   :  { %v414_v3 = vpop.eup %413  ;;  %v99_v4 = vsel %vm97_vm2, %v98_v61, %v96_v63  ;;  %v654_v5 = vpop.xlane.xlu1 %73  ;;  %v115_v10 = vmul.f32 %v412_v62, %v56_v51 }
  0xa3   :  { %423 = vrcp.f32 %v99_v4  ;;  %v101_v11 = vmul.f32 %v414_v3, %v50_v52  ;;  %v657_v15 = vpop.xlane.xlu0 %70  ;;  %vm158_vm15 = vcmp.eq.f32.partialorder %v654_v5, inf  ;;  %v161_v48 = vand.u32 2147483648, %v654_v5 }
  0xa4   :  { %425 = vrsqrt.f32 %v654_v5  ;;  %v117_v24 = vsel %vm116_vm7, %v56_v51, %v115_v10  ;;  %vm160_vm0 = vcmp.eq.f32.partialorder %v654_v5, 0.0  ;;  %vm151_vm7 = vcmp.eq.f32.partialorder %v657_v15, inf }
  0xa5   :  { %v103_v14 = vsel %vm102_vm4, %v50_v52, %v101_v11  ;;  %v416_v18 = vpop.eup %415  ;;  %v120_v31 = vsel %vm118_vm8, %v119_v27, %v117_v24  ;;  %vm146_vm4 = vcmp.eq.f32.partialorder %v648_v57, 0.0  ;;  %vm153_vm8 = vcmp.eq.f32.partialorder %v657_v15, 0.0 }
  0xa6   :  { %v106_v20 = vsel %vm104_vm6, %v105_v13, %v103_v14  ;;  %v659_v21 = vpop.xlane.xlu1 %79  ;;  %v122_v25 = vmul.f32 %v416_v18, %v644_v54  ;;  %v418_v26 = vpop.eup %417  ;;  %v207_v13 = vld [vmem:[%s839_s1 + $0x10] sm:$0xff]  ;;  %v147_v14 = vand.u32 2147483648, %v648_v57 }
  0xa7   :  { %427 = vrcp.f32 %v106_v20  ;;  %v663_v30 = vpop.xlane.xlu0 %76  ;;  %v129_v36 = vmul.f32 %v418_v26, %v642_v53  ;;  %vm172_vm2 = vcmp.eq.f32.partialorder %v659_v21, inf  ;;  %v175_v62 = vand.u32 2147483648, %v659_v21 }
  0xa8   :  { %429 = vrsqrt.f32 %v659_v21  ;;  %v124_v37 = vsel %vm123_vm9, %v644_v54, %v122_v25  ;;  %vm174_vm3 = vcmp.eq.f32.partialorder %v659_v21, 0.0 }
  0xa9   :  { %431 = vrcp.f32 %v113_v19  ;;  %v420_v33 = vpop.eup %419  ;;  %v127_v47 = vsel %vm125_vm12, %v126_v43, %v124_v37  ;;  %v131_v51 = vsel %vm130_vm10, %v642_v53, %v129_v36  ;;  %vm167_vm12 = vcmp.eq.f32.partialorder %v663_v30, 0.0 }
  0xaa   :  { %433 = vrsqrt.f32 %v657_v15  ;;  %v667_v32 = vpop.xlane.xlu1 %85  ;;  %v422_v39 = vpop.eup %421  ;;  %v143_v59 = vmul.f32 %v420_v33, %v648_v57  ;;  %v134_v4 = vsel %vm132_vm11, %v133_v42, %v131_v51  ;;  %v209_v51 = vld [vmem:[%s839_s1 + $0x20] sm:$0xff]  ;;  %vm165_vm11 = vcmp.eq.f32.partialorder %v663_v30, inf }
  0xab   :  { %435 = vrsqrt.f32 %v667_v32  ;;  %v683_v45 = vpop.xlane.xlu0 %82  ;;  %v136_v52 = vmul.f32 %v422_v39, %v650_v60  ;;  %vm186_vm5 = vcmp.eq.f32.partialorder %v667_v32, inf  ;;  %v189_v26 = vand.u32 2147483648, %v667_v32 }
  0xac   :  { %437 = vrcp.f32 %v120_v31  ;;  %v145_v18 = vsel %vm144_vm13, %v648_v57, %v143_v59  ;;  %vm188_vm6 = vcmp.eq.f32.partialorder %v667_v32, 0.0  ;;  %vm179_vm13 = vcmp.eq.f32.partialorder %v683_v45, inf }
  0xad   :  { %v424_v44 = vpop.eup %423  ;;  %439 = vrsqrt.f32 %v663_v30  ;;  %v138_v12 = vsel %vm137_vm14, %v650_v60, %v136_v52  ;;  %v154_v60 = vand.u32 2147483648, %v657_v15 }
  0xae   :  { %v426_v46 = vpop.eup %425  ;;  %v687_v49 = vpop.xlane.xlu1 %91  ;;  %v222_v50 = vmul.f32 %v424_v44, %v205_v38  ;;  %v141_v24 = vsel %vm139_vm1, %v140_v56, %v138_v12  ;;  %v148_v38 = vsel %vm146_vm4, %v147_v14, %v145_v18  ;;  %v182_v12 = vand.u32 2147483648, %v683_v45 }
  0xaf   :  { %v157_v54 = vmul.f32 %v426_v46, %v654_v5  ;;  %441 = vrsqrt.f32 %v687_v49  ;;  %v707_v63 = vpop.xlane.xlu0 %88  ;;  %vm200_vm9 = vcmp.eq.f32.partialorder %v687_v49, inf  ;;  %vm202_vm10 = vcmp.eq.f32.partialorder %v687_v49, 0.0 }
  0xb0   :  { %255 = vperm.xlu0 %405, %v222_v50   ;;  %443 = vrcp.f32 %v127_v47  ;;  %v203_v44 = vand.u32 2147483648, %v687_v49  ;;  %vm193_vm14 = vcmp.eq.f32.partialorder %v707_v63, inf }
  0xb1   :  { %v428_v58 = vpop.eup %427  ;;  %v159_v61 = vsel %vm158_vm15, %v654_v5, %v157_v54  ;;  %445 = vrsqrt.f32 %v683_v45  ;;  %vm181_vm15 = vcmp.eq.f32.partialorder %v683_v45, 0.0 }
  0xb2   :  { %v430_v3 = vpop.eup %429  ;;  %v162_v7 = vsel %vm160_vm0, %v161_v48, %v159_v61  ;;  %v224_v10 = vmul.f32 %v428_v58, %v206_v55  ;;  %v168_v55 = vand.u32 2147483648, %v663_v30  ;;  %vm195_vm0 = vcmp.eq.f32.partialorder %v707_v63, 0.0 }
  0xb3   :  { %v432_v11 = vpop.eup %431  ;;  %447 = vrcp.f32 %v162_v7  ;;  %v171_v5 = vmul.f32 %v430_v3, %v659_v21 }
  0xb4   :  { %v434_v53 = vpop.eup %433  ;;  %260 = vperm.xlu1 %406, %v224_v10   ;;  %449 = vrsqrt.f32 %v707_v63  ;;  %v226_v27 = vmul.f32 %v432_v11, %v207_v13  ;;  %v216_v11 = vld [vmem:[%s839_s1 + $0x58] sm:$0xff] }
  0xb5   :  { %451 = vrcp.f32 %v134_v4  ;;  %v173_v19 = vsel %vm172_vm2, %v659_v21, %v171_v5  ;;  %v436_v20 = vpop.eup %435  ;;  %v150_v33 = vmul.f32 %v434_v53, %v657_v15  ;;  %v208_v21 = vld [vmem:[%s839_s1 + $0x18] sm:$0xff] }
  0xb6   :  { %v176_v25 = vsel %vm174_vm3, %v175_v62, %v173_v19  ;;  %v438_v31 = vpop.eup %437  ;;  %v185_v36 = vmul.f32 %v436_v20, %v667_v32  ;;  %v218_v19 = vld [vmem:[%s839_s1 + $0x68] sm:$0xff]  ;;  %v211_v20 = vld [vmem:[%s839_s1 + $0x30] sm:$0xff] }
  0xb7   :  { %453 = vrcp.f32 %v176_v25  ;;  %v440_v37 = vpop.eup %439  ;;  %v228_v46 = vmul.f32 %v438_v31, %v208_v21  ;;  %v152_v48 = vsel %vm151_vm7, %v657_v15, %v150_v33  ;;  %v210_v15 = vld [vmem:[%s839_s1 + $0x28] sm:$0xff]  ;;  %v212_v21 = vld [vmem:[%s839_s1 + $0x38] sm:$0xff] }
  0xb8   :  { %265 = vperm.xlu1 %406, %v226_v27   ;;  %455 = vrcp.f32 %v141_v24  ;;  %v187_v39 = vsel %vm186_vm5, %v667_v32, %v185_v36  ;;  %v164_v57 = vmul.f32 %v440_v37, %v663_v30  ;;  %v214_v32 = vld [vmem:[%s839_s1 + $0x48] sm:$0xff]  ;;  %v155_v59 = vsel %vm153_vm8, %v154_v60, %v152_v48  ;;  %v220_v36 = vld [vmem:[%s839_s1 + $0x78] sm:$0xff] }
  0xb9   :  { %v442_v42 = vpop.eup %441  ;;  %v190_v43 = vsel %vm188_vm6, %v189_v26, %v187_v39  ;;  %v196_v24 = vand.u32 2147483648, %v707_v63 }
  0xba   :  { %v444_v47 = vpop.eup %443  ;;  %457 = vrcp.f32 %v190_v43  ;;  %v199_v50 = vmul.f32 %v442_v42, %v687_v49  ;;  %v166_v7 = vsel %vm165_vm11, %v663_v30, %v164_v57  ;;  %v213_v42 = vld [vmem:[%s839_s1 + $0x40] sm:$0xff] }
  0xbb   :  { %v446_v52 = vpop.eup %445  ;;  %459 = vrcp.f32 %v148_v38  ;;  %v230_v3 = vmul.f32 %v444_v47, %v209_v51  ;;  %v169_v5 = vsel %vm167_vm12, %v168_v55, %v166_v7  ;;  %v217_v57 = vld [vmem:[%s839_s1 + $0x60] sm:$0xff] }
  0xbc   :  { %270 = vperm.xlu1 %406, %v228_v46   ;;  %v201_v56 = vsel %vm200_vm9, %v687_v49, %v199_v50  ;;  %v178_v10 = vmul.f32 %v446_v52, %v683_v45  ;;  %v215_v46 = vld [vmem:[%s839_s1 + $0x50] sm:$0xff] }
  0xbd   :  { %v448_v54 = vpop.eup %447  ;;  %v204_v61 = vsel %vm202_vm10, %v203_v44, %v201_v56 }
  0xbe   :  { %v450_v58 = vpop.eup %449  ;;  %v240_v62 = vmul.f32 %v448_v54, %v214_v32  ;;  %461 = vrcp.f32 %v204_v61  ;;  %v180_v18 = vsel %vm179_vm13, %v683_v45, %v178_v10  ;;  %v219_v32 = vld [vmem:[%s839_s1 + $0x70] sm:$0xff]  ;;  %s496_s1 = smov [#allocation2]  }
  0xbf   :  { %v452_v4 = vpop.eup %451  ;;  %463 = vrcp.f32 %v155_v59  ;;  %v192_v30 = vmul.f32 %v450_v58, %v707_v63  ;;  %v183_v27 = vsel %vm181_vm15, %v182_v12, %v180_v18  ;;  %s390_s15 = sshll.u32 %s496_s1, 4  ;;  %s391_s15 = int_to_ptr.vmem [resolvable:$true] %s390_s15 }
  0xc0   :  { %300 = vperm.xlu0 %405, %v240_v62   ;;  %275 = vperm.xlu1 %406, %v230_v3   ;;  %v232_v53 = vmul.f32 %v452_v4, %v210_v15  ;;  %465 = vrcp.f32 %v169_v5  ;;  %s471_s16 = scalar_lea.vmem %s391_s15, 512  ;;  %p476_p1 = scmp.lt.s32.totalorder %s391_s15, %s391_s15 }
  0xc1   :  { %v454_v49 = vpop.eup %453  ;;  %v194_v26 = vsel %vm193_vm14, %v707_v63, %v192_v30  ;;  %467 = vrcp.f32 %v183_v27  ;;  %p472_p0 = scmp.ne.s32.totalorder %s391_s15, %s471_s16  ;;  %p477_p2 = scmp.lt.s32.totalorder %s471_s16, %s471_s16 }
  0xc2   :  { %v244_v13 = vmul.f32 %v454_v49, %v216_v11  ;;  %v456_v14 = vpop.eup %455  ;;  %v197_v37 = vsel %vm195_vm0, %v196_v24, %v194_v26 }
  0xc3   :  { %v234_v31 = vmul.f32 %v456_v14, %v211_v20  ;;  %469 = vrcp.f32 %v197_v37  ;;  %p478_p3 = por %p477_p2, %p476_p1 }
  0xc4   :  { %310 = vperm.xlu0 %405, %v244_v13   ;;  %280 = vperm.xlu1 %406, %v232_v53   ;;  %v458_v25 = vpop.eup %457 }
  0xc5   :  { %v248_v45 = vmul.f32 %v458_v25, %v218_v19  ;;  %v460_v33 = vpop.eup %459  ;;  %p479_p4 = pnand %p478_p3, %p472_p0 }
  0xc6   :  { %v236_v39 = vmul.f32 %v460_v33, %v212_v21 }
  0xc8   :  { %320 = vperm.xlu0 %405, %v248_v45   ;;  %285 = vperm.xlu1 %406, %v234_v31   ;;  %v462_v60 = vpop.eup %461 }
  0xc9   :  { %v252_v38 = vmul.f32 %v462_v60, %v220_v36  ;;  %v464_v63 = vpop.eup %463 }
  0xca   :  { %v238_v43 = vmul.f32 %v464_v63, %v213_v42  ;;  %v466_v44 = vpop.eup %465 }
  0xcb   :  { %v242_v47 = vmul.f32 %v466_v44, %v215_v46  ;;  %v468_v48 = vpop.eup %467 }
  0xcc   :  { %330 = vperm.xlu0 %405, %v252_v38   ;;  %290 = vperm.xlu1 %406, %v236_v39   ;;  %v246_v51 = vmul.f32 %v468_v48, %v217_v57 }
  0xcd   :  { %v470_v50 = vpop.eup %469 }
  0xce   :  { %v250_v52 = vmul.f32 %v470_v50, %v219_v32 }
  0xd0   :  { %295 = vperm.xlu1 %406, %v238_v43  }
  0xd4   :  { %305 = vperm.xlu1 %406, %v242_v47  }
  0xd8   :  { %315 = vperm.xlu1 %406, %v246_v51  }
  0xdc   :  { %325 = vperm.xlu1 %406, %v250_v52  }
 0x12f   :  { %v256_v54 = vpop.permute.xlu0 %255 }
 0x130   :  { %v333_v55 = vmul.f32 %v256_v54, %v522_v1 }
 0x132   :  { %349 = vxpose.xlu1.b32.start [1/16] (narrow) %v333_v55, 32 }
 0x133   :  { %v261_v56 = vpop.permute.xlu1 %260 }
 0x134   :  { %v334_v58 = vmul.f32 %v261_v56, %v538_v6 }
 0x136   :  { %350 = vxpose.xlu1.b32.cont [2/16] (narrow) %v334_v58, 32 }
 0x137   :  { %v266_v59 = vpop.permute.xlu1 %265 }
 0x138   :  { %v335_v61 = vmul.f32 %v266_v59, %v517_v0 }
 0x13a   :  { %351 = vxpose.xlu1.b32.cont [3/16] (narrow) %v335_v61, 32 }
 0x13b   :  { %v271_v62 = vpop.permute.xlu1 %270 }
 0x13c   :  { %v336_v3 = vmul.f32 %v271_v62, %v527_v2 }
 0x13e   :  { %352 = vxpose.xlu1.b32.cont [4/16] (narrow) %v336_v3, 32 }
 0x13f   :  { %v276_v4 = vpop.permute.xlu1 %275  ;;  %v301_v12 = vpop.permute.xlu0 %300 }
 0x140   :  { %v337_v7 = vmul.f32 %v276_v4, %v550_v9  ;;  %v342_v9 = vmul.f32 %v301_v12, %v579_v22 }
 0x142   :  { %353 = vxpose.xlu1.b32.cont [5/16] (narrow) %v337_v7, 32 }
 0x143   :  { %v281_v10 = vpop.permute.xlu1 %280  ;;  %v311_v5 = vpop.permute.xlu0 %310 }
 0x144   :  { %v338_v1 = vmul.f32 %v281_v10, %v545_v8 }
 0x146   :  { %354 = vxpose.xlu1.b32.cont [6/16] (narrow) %v338_v1, 32 }
 0x147   :  { %v286_v11 = vpop.permute.xlu1 %285  ;;  %v321_v53 = vpop.permute.xlu0 %320 }
 0x148   :  { %v339_v6 = vmul.f32 %v286_v11, %v568_v17  ;;  %v344_v17 = vmul.f32 %v311_v5, %v595_v28 }
 0x14a   :  { %355 = vxpose.xlu1.b32.cont [7/16] (narrow) %v339_v6, 32 }
 0x14b   :  { %v291_v15 = vpop.permute.xlu1 %290  ;;  %v331_v18 = vpop.permute.xlu0 %330 }
 0x14c   :  { %v340_v0 = vmul.f32 %v291_v15, %v563_v16 }
 0x14e   :  { %356 = vxpose.xlu1.b32.cont [8/16] (narrow) %v340_v0, 32 }
 0x14f   :  { %v296_v49 = vpop.permute.xlu1 %295 }
 0x150   :  { %v341_v2 = vmul.f32 %v296_v49, %v584_v23  ;;  %v346_v23 = vmul.f32 %v321_v53, %v611_v34 }
 0x152   :  { %357 = vxpose.xlu1.b32.cont [9/16] (narrow) %v341_v2, 32 }
 0x153   :  { %v306_v30 = vpop.permute.xlu1 %305 }
 0x154   :  { %v343_v8 = vmul.f32 %v306_v30, %v600_v29  ;;  %v348_v29 = vmul.f32 %v331_v18, %v627_v40 }
 0x156   :  { %358 = vxpose.xlu1.b32.cont [10/16] (narrow) %v342_v9, 32 }
 0x157   :  { %v316_v13 = vpop.permute.xlu1 %315 }
 0x158   :  { %v345_v16 = vmul.f32 %v316_v13, %v616_v35 }
 0x15a   :  { %359 = vxpose.xlu1.b32.cont [11/16] (narrow) %v343_v8, 32 }
 0x15b   :  { %v326_v14 = vpop.permute.xlu1 %325 }
 0x15c   :  { %v347_v22 = vmul.f32 %v326_v14, %v632_v41 }
 0x15e   :  { %360 = vxpose.xlu1.b32.cont [12/16] (narrow) %v344_v17, 32 }
 0x162   :  { %361 = vxpose.xlu1.b32.cont [13/16] (narrow) %v345_v16, 32 }
 0x166   :  { %362 = vxpose.xlu1.b32.cont [14/16] (narrow) %v346_v23, 32 }
 0x16a   :  { %363 = vxpose.xlu1.b32.cont [15/16] (narrow) %v347_v22, 32 }
 0x16e   :  { %364 = vxpose.xlu1.b32.end [16/16] (narrow) %v348_v29, 32 }
 0x1b2   :  { %v365_v19 = vpop.trf.xlu1 }
 0x1b3   :  { %381 = vst [vmem:[#allocation2] sm:$0xff] %v365_v19 }
 0x1b6   :  { %v366_v28 = vpop.trf.xlu1 }
 0x1b7   :  { %382 = vst [vmem:[#allocation2 + $0x8] sm:$0xff] %v366_v28 }
 0x1ba   :  { %v367_v20 = vpop.trf.xlu1 }
 0x1bb   :  { %383 = vst [vmem:[#allocation2 + $0x10] sm:$0xff] %v367_v20 }
 0x1be   :  { %v368_v35 = vpop.trf.xlu1 }
 0x1bf   :  { %384 = vst [vmem:[#allocation2 + $0x18] sm:$0xff] %v368_v35 }
 0x1c0   :  { %482 = shalt.err (!%p479_p4)
}
 0x1c1   :  { %s483_s19 = scalar_lea.hbm %s840_s2, 512 }
 0x1c2   :  { %p484_p5 = scmp.ne.s32.totalorder %s840_s2, %s483_s19  ;;  %p487_p6 = scmp.lt.u32.totalorder %s483_s19, %s840_s2 }
 0x1c4   :  { %p489_p7 = pnand %p487_p6, %p484_p5 }
 0x1c6   :  { %492 = shalt.err (!%p489_p7)
}
 0x1c7   :  { %s497_s24 = smov 128   ;;  %s498_s25 = smov 8  }
 0x1c8   :  { %396 = dma.vmem_to_hbm [thread:$0]  %s391_s15, 512, %s840_s2, [#allocation3], %s497_s24, %s497_s24, %s498_s25  }
 0x1c9   :  { %493 = dma.done.wait [#allocation3], 512  }
 0x1ca   :  { %494 = vsyncadd [#allocation3], 4294966784 }
 0x1cb   :  { %400 = vsyncpa [#allocation3], 1 }

</bundles_post_ra>
